<compile_context>
chip_gen: v7x
topology: tpu7x:2x2x1
jax: 0.10.0
libtpu: 0.0.40
codegen_flags: <defaults>
</compile_context>

<pallas_src>
import functools

import jax
import jax.numpy as jnp
from jax.experimental import pallas as pl
from jax.experimental.pallas import tpu as pltpu

_C = 18            # input channels the module expects
_S = 4             # synapse slots
_CS = _C * _S      # 72 output columns per dendrite
_CPAD = 24         # channel axis zero-padded to a sublane multiple for the MXU


def _synaps_kernel(x_ref, m_ref, q_ref, o_ref):
    # x_ref: (tile_r, _CPAD)   compact input rows (zero-padded channels)
    # m_ref: (_CPAD, D*72)     selection * (W*k): one non-zero per column
    # q_ref: (1, D*72)         q*k
    # o_ref: (tile_r, D*72)
    # The dot fuses the channel->(d,c,j) broadcast with the weight multiply on
    # the MXU; only one term per column is non-zero, so the result is exact.
    y = jnp.dot(
        x_ref[...], m_ref[...],
        preferred_element_type=jnp.float32,
        precision=jax.lax.Precision.HIGHEST,   # keep full f32 accuracy
    )
    o_ref[...] = jax.nn.sigmoid(y - q_ref[...]).astype(o_ref.dtype)


def _round_up(v, m):
    return ((v + m - 1) // m) * m


def dconv_synaps_forward(x, W, q, k=10.0, *, tile_r=None, out_dtype=jnp.float32):
    """x: (B, 18, X_width) f32; W, q: (dendrite, 18, 4) f32.

    Returns (B, X_width, dendrite, 18, 4), matching the PyTorch module.
    """
    B, C, Xw = x.shape
    D = W.shape[0]
    assert C == _C, "DConvSynaps expects 18 input channels"
    assert W.shape == (D, _C, _S) and q.shape == (D, _C, _S)

    R = B * Xw
    cols = D * _CS

    # --- tiny parameter prep: fold k, build the selection*(W*k) matrix ---
    wk = (W.astype(jnp.float32) * k).reshape(cols)            # col = d*72 + c*4 + j
    qk = (q.astype(jnp.float32) * k).reshape(1, cols)
    col_chan = (jnp.arange(cols) % _CS) // _S                  # channel of each column
    sel = jnp.arange(_CPAD)[:, None] == col_chan[None, :]      # (_CPAD, cols)
    mk = jnp.where(sel, wk[None, :], 0.0).astype(jnp.float32)  # (_CPAD, cols)

    # --- compact input view (B,18,Xw) -> (R,_CPAD); no D/4x replication ---
    x2 = jnp.transpose(x, (0, 2, 1)).reshape(R, _C).astype(jnp.float32)
    x2 = jnp.pad(x2, ((0, 0), (0, _CPAD - _C)))

    # --- row tile: as large as a conservative double-buffered VMEM budget allows ---
    if tile_r is None:
        vmem_budget = 16 * 1024 * 1024
        bytes_per_row = 2 * 4 * (_CPAD + cols)    # 2 buffers x f32 x (in + out)
        tile_r = min(2048, max(256, vmem_budget // bytes_per_row))
    tile_r = max(8, (min(int(tile_r), _round_up(R, 8)) // 8) * 8)

    grid = (pl.cdiv(R, tile_r),)   # ragged last block handled by Pallas; no pad/slice

    out2d = pl.pallas_call(
        _synaps_kernel,
        out_shape=jax.ShapeDtypeStruct((R, cols), out_dtype),
        grid=grid,
        in_specs=[
            pl.BlockSpec((tile_r, _CPAD), lambda i: (i, 0)),   # x row tile
            pl.BlockSpec((_CPAD, cols), lambda i: (0, 0)),     # W*k selection (resident)
            pl.BlockSpec((1, cols), lambda i: (0, 0)),         # q*k (resident)
        ],
        out_specs=pl.BlockSpec((tile_r, cols), lambda i: (i, 0)),
        compiler_params=pltpu.CompilerParams(
            dimension_semantics=("parallel",),
            vmem_limit_bytes=32 * 1024 * 1024,
        ),
    )(x2, mk, qk)

    # free reshape: (R, D*72) -> (B, Xw, D, 18, 4)
    return out2d.reshape(B, Xw, D, _C, _S)


def _init_params(key, dendrite=1, init_w_mul=0.01, init_w_add=0.2, init_q=0.0):
    kw, kq = jax.random.split(key)
    W = init_w_mul * jnp.abs(jax.random.normal(kw, (dendrite, _C, _S))) + init_w_add
    q = init_w_mul * jnp.abs(jax.random.normal(kq, (dendrite, _C, _S))) + init_q
    return W.astype(jnp.float32), q.astype(jnp.float32)


def _reference(x, W, q, k):
    # pure-jnp mirror of the PyTorch forward
    xb = jnp.transpose(x, (0, 2, 1))[:, :, None, :, None]      # (B, Xw, 1, 18, 1)
    return jax.nn.sigmoid((xb * W[None, None] - q[None, None]) * k)


if __name__ == "__main__":
    key = jax.random.PRNGKey(0)
    k_x, k_p = jax.random.split(key)

    B, C, Xw = 2, 18, 16          # small shapes consistent with the module
    dendrite, k = 1, 10

    x = jax.random.normal(k_x, (B, C, Xw), dtype=jnp.float32)
    W, q = _init_params(k_p, dendrite=dendrite)

    fwd = jax.jit(functools.partial(dconv_synaps_forward, k=float(k)))
    out = jax.block_until_ready(fwd(x, W, q))

    ref = _reference(x, W, q, k)
    assert out.shape == (B, Xw, dendrite, _C, _S), out.shape
    assert jnp.allclose(out, ref, atol=2e-5, rtol=2e-5), "mismatch vs reference"

    print("KERNEL_OK")
</pallas_src>

<mosaic_0001>
module attributes {stable_mosaic.version = 11 : i64} {
  func.func @_synaps_kernel(%arg0: i32, %arg1: memref<32x24xf32, #tpu.memory_space<vmem>>, %arg2: memref<24x72xf32, #tpu.memory_space<vmem>>, %arg3: memref<1x72xf32, #tpu.memory_space<vmem>>, %arg4: memref<32x72xf32, #tpu.memory_space<vmem>>) attributes {dimension_semantics = [#tpu.dimension_semantics<parallel>], iteration_bounds = array<i64: 1>, scalar_prefetch = 0 : i64, scratch_operands = 0 : i64, tpu.core_type = #tpu.core_type<tc>, window_params = [{transform_indices = @transform_0, window_bounds = array<i64: 32, 24>}, {pipeline_mode = #tpu.pipeline_mode<synchronous>, transform_indices = @transform_1, window_bounds = array<i64: 24, 72>}, {pipeline_mode = #tpu.pipeline_mode<synchronous>, transform_indices = @transform_2, window_bounds = array<i64: 1, 72>}, {transform_indices = @transform_3, window_bounds = array<i64: 32, 72>}]} {
    %c0 = arith.constant 0 : index
    %c0_0 = arith.constant 0 : index
    %0 = vector.load %arg1[%c0, %c0_0] : memref<32x24xf32, #tpu.memory_space<vmem>>, vector<32x24xf32>
    %c0_1 = arith.constant 0 : index
    %c0_2 = arith.constant 0 : index
    %1 = vector.load %arg2[%c0_1, %c0_2] : memref<24x72xf32, #tpu.memory_space<vmem>>, vector<24x72xf32>
    %cst = arith.constant dense<0.000000e+00> : vector<32x72xf32>
    %2 = tpu.matmul %0, %1, %cst {dimension_numbers = #tpu.dot_dimension_numbers<[1], [0], [0], [1], [0, 0, 1, 1], [], []>, precision = #tpu.contract_precision<fp32>} : vector<32x24xf32>, vector<24x72xf32>, vector<32x72xf32> -> vector<32x72xf32>
    %c0_3 = arith.constant 0 : index
    %c0_4 = arith.constant 0 : index
    %3 = vector.load %arg3[%c0_3, %c0_4] : memref<1x72xf32, #tpu.memory_space<vmem>>, vector<1x72xf32>
    %4 = vector.broadcast %3 : vector<1x72xf32> to vector<32x72xf32>
    %5 = arith.subf %2, %4 : vector<32x72xf32>
    %6 = arith.negf %5 : vector<32x72xf32>
    %7 = math.exp %6 : vector<32x72xf32>
    %cst_5 = arith.constant 1.000000e+00 : f32
    %8 = vector.broadcast %cst_5 : f32 to vector<32x72xf32>
    %9 = arith.addf %8, %7 : vector<32x72xf32>
    %10 = arith.divf %8, %9 : vector<32x72xf32>
    %c0_6 = arith.constant 0 : index
    %c0_7 = arith.constant 0 : index
    %11 = vector.load %arg4[%c0_6, %c0_7] : memref<32x72xf32, #tpu.memory_space<vmem>>, vector<32x72xf32>
    tpu.vector_store %arg4[%c0_6, %c0_7], %10 {strides = array<i32>} : memref<32x72xf32, #tpu.memory_space<vmem>>, vector<32x72xf32>,
    return
  }
  func.func @transform_0(%arg0: i32) -> (i32, i32) {
    %c0_i32 = arith.constant 0 : i32
    %c0_i32_0 = arith.constant 0 : i32
    return %arg0, %c0_i32 : i32, i32
  }
  func.func @transform_1(%arg0: i32) -> (i32, i32) {
    %c0_i32 = arith.constant 0 : i32
    %c0_i32_0 = arith.constant 0 : i32
    %c0_i32_1 = arith.constant 0 : i32
    return %c0_i32, %c0_i32_0 : i32, i32
  }
  func.func @transform_2(%arg0: i32) -> (i32, i32) {
    %c0_i32 = arith.constant 0 : i32
    %c0_i32_0 = arith.constant 0 : i32
    %c0_i32_1 = arith.constant 0 : i32
    return %c0_i32, %c0_i32_0 : i32, i32
  }
  func.func @transform_3(%arg0: i32) -> (i32, i32) {
    %c0_i32 = arith.constant 0 : i32
    %c0_i32_0 = arith.constant 0 : i32
    return %arg0, %c0_i32 : i32, i32
  }
}

</mosaic_0001>

<bundles_post_ra>
// kernel: dconv_synaps_forward.1
= control target key start
LH: loop header
LB: loop body
LE: loop exit
PB: predicated region body
PF: predicated region fallthrough
CT: control target
= control target key end

     0   :  { %vm21_vm0 = vcmask 195584   ;;  %vm670_vm1 = vcmask 588800   ;;  %s980_s1 = inlined_call_operand.vmem [shape: f32[24,72], index: 1, kind: input, shape index: {}]   ;;  %s981_s0 = inlined_call_operand.vmem [shape: f32[32,24], index: 0, kind: input, shape index: {}]   ;;  %s982_s2 = inlined_call_operand.vmem [shape: f32[1,72], index: 2, kind: input, shape index: {}]   ;;  %s983_s3 = inlined_call_operand.vmem [shape: f32[32,72], index: 3, kind: output, shape index: {}]  }
   0x1   :  { %v18_v0 = vld [vmem:[%s980_s1] sm:$0xff]  ;;  %v19_v1 = vld [vmem:[%s980_s1 + $0x8] sm:$0xff]  ;;  %v20_v2 = vld [vmem:[%s980_s1 + $0x10] sm:$0xff] }
   0x2   :  { %v35_v3 = vand.u32 4294901760, %v18_v0  ;;  %v38_v4 = vand.u32 4294901760, %v19_v1  ;;  %v14_v5 = vld [vmem:[%s981_s0] sm:$0xff]  ;;  %v15_v6 = vld [vmem:[%s981_s0 + $0x8] sm:$0xff]  ;;  %v16_v7 = vld [vmem:[%s981_s0 + $0x10] sm:$0xff]  ;;  %v896_v8 = vand.u32 4294901760, %v20_v2 }
   0x3   :  { %v23_v9 = vsel %vm21_vm0, %v14_v5, 0  ;;  %v26_v10 = vsel %vm21_vm0, %v15_v6, 0  ;;  %v29_v11 = vsel %vm21_vm0, %v16_v7, 0  ;;  %v17_v12 = vld [vmem:[%s981_s0 + $0x18] sm:$0xff]  ;;  %v679_v53 = vld [vmem:[%s982_s2] ss:$0 sm:$0xff] }
   0x4   :  { %v904_v13 = vpack.c.bf16 %v38_v4, %v35_v3  ;;  %v906_v14 = vand.u32 4294901760, %v23_v9  ;;  %v908_v15 = vand.u32 4294901760, %v26_v10  ;;  %v144_v16 = vsub.f32 %v18_v0, %v35_v3 }
   0x5   :  { %v151_v17 = vsub.f32 %v19_v1, %v38_v4  ;;  %v910_v18 = vand.u32 4294901760, %v29_v11  ;;  %v32_v19 = vsel %vm21_vm0, %v17_v12, 0  ;;  %v914_v20 = vsub.f32 %v20_v2, %v896_v8 }
   0x6   :  { %811 = vmatprep.subr.bf16.mxu0 %v904_v13  ;;  %799 = vmatprep.subr.bf16.mxu1 %v904_v13  ;;  %v919_v21 = vsub.f32 %v23_v9, %v906_v14  ;;  %v922_v22 = vsub.f32 %v26_v10, %v908_v15  ;;  %v145_v23 = vand.u32 4294901760, %v144_v16  ;;  %v924_v24 = vand.u32 4294901760, %v32_v19 }
   0x7   :  { %813 = vmatpush3.bf16.msra.mxu0 %v904_v13  ;;  %801 = vmatpush3.bf16.msra.mxu1 %v904_v13  ;;  %v152_v25 = vand.u32 4294901760, %v151_v17  ;;  %v929_v26 = vsub.f32 %v29_v11, %v910_v18  ;;  %v159_v27 = vand.u32 4294901760, %v914_v20  ;;  %v806_v49 = vpack.c.bf16 %v151_v17, %v144_v16 }
   0x8   :  { %766 = vmatprep.subr.mxu0 %v896_v8  ;;  %v104_v28 = vand.u32 4294901760, %v919_v21  ;;  %730 = vmatprep.subr.mxu1 %v896_v8  ;;  %v114_v29 = vand.u32 4294901760, %v922_v22  ;;  %v146_v30 = vsub.f32 %v144_v16, %v145_v23  ;;  %v133_v31 = vsub.f32 %v32_v19, %v924_v24 }
   0x9   :  { %v153_v32 = vsub.f32 %v151_v17, %v152_v25  ;;  %v814_v33 = vpack.c.bf16 %v152_v25, %v145_v23  ;;  %v124_v34 = vand.u32 4294901760, %v929_v26  ;;  %v160_v35 = vsub.f32 %v914_v20, %v159_v27 }
   0xa   :  { %768 = vmatprep.mubr.f32.mxu0 %v104_v28  ;;  %v105_v36 = vsub.f32 %v919_v21, %v104_v28  ;;  %v115_v37 = vsub.f32 %v922_v22, %v114_v29  ;;  %v147_v38 = vand.u32 4294901760, %v146_v30  ;;  %v134_v39 = vand.u32 4294901760, %v133_v31 }
   0xb   :  { %767 = vmatpush3.msra.mxu0 %v896_v8  ;;  %731 = vmatpush3.msra.mxu1 %v896_v8  ;;  %v154_v40 = vand.u32 4294901760, %v153_v32  ;;  %v125_v41 = vsub.f32 %v929_v26, %v124_v34  ;;  %v161_v47 = vand.u32 4294901760, %v160_v35 }
   0xc   :  { %769 = vmatmul.mubr.f32.vlgmr.msra.gmra.mrb[0].mxu0 %v114_v29  ;;  %v106_v42 = vand.u32 4294901760, %v105_v36  ;;  %v116_v43 = vand.u32 4294901760, %v115_v37  ;;  %815 = vmatprep.subr.bf16.mxu0 %v814_v33  ;;  %v135_v44 = vsub.f32 %v133_v31, %v134_v39 }
   0xd   :  { %v802_v45 = vpack.c.bf16 %v154_v40, %v147_v38  ;;  %771 = vmatprep.mubr.f32.mxu0 %v124_v34  ;;  %817 = vmatpush3.bf16.msra.mxu0 %v814_v33  ;;  %v126_v46 = vand.u32 4294901760, %v125_v41 }
   0xe   :  { %732 = vmatprep.mubr.f32.mxu1 %v106_v42  ;;  %778 = vmatprep.subr.mxu0 %v159_v27  ;;  %v136_v48 = vand.u32 4294901760, %v135_v44 }
   0xf   :  { %733 = vmatmul.mubr.f32.vlgmr.msra.gmra.mrb[0].mxu1 %v116_v43  ;;  %803 = vmatprep.subr.bf16.mxu1 %v802_v45 }
  0x10   :  { %805 = vmatpush3.bf16.msra.mxu1 %v802_v45  ;;  %772 = vmatmul.mubr.f32.gmra.mrb[2].mxu0 %v134_v39 }
  0x11   :  { %735 = vmatprep.mubr.f32.mxu1 %v126_v46  ;;  %742 = vmatprep.subr.mxu1 %v161_v47 }
  0x12   :  { %779 = vmatpush3.msra.mxu0 %v159_v27  ;;  %780 = vmatprep.mubr.f32.mxu0 %v906_v14 }
  0x13   :  { %736 = vmatmul.mubr.f32.gmra.mrb[2].mxu1 %v136_v48  ;;  %819 = vmatprep.subr.bf16.mxu0 %v904_v13 }
  0x14   :  { %743 = vmatpush3.msra.mxu1 %v161_v47  ;;  %781 = vmatmul.mubr.f32.vlgmr.msra.gmra.mrb[0].mxu0 %v908_v15 }
  0x15   :  { %744 = vmatprep.mubr.f32.mxu1 %v906_v14  ;;  %807 = vmatprep.subr.bf16.mxu1 %v806_v49 }
  0x16   :  { %783 = vmatprep.mubr.f32.mxu0 %v910_v18  ;;  %821 = vmatpush3.bf16.msra.mxu0 %v904_v13 }
  0x17   :  { %745 = vmatmul.mubr.f32.vlgmr.msra.gmra.mrb[0].mxu1 %v908_v15  ;;  %790 = vmatprep.subr.mxu0 %v896_v8 }
  0x18   :  { %809 = vmatpush3.bf16.msra.mxu1 %v806_v49  ;;  %784 = vmatmul.mubr.f32.gmra.mrb[2].mxu0 %v924_v24 }
  0x19   :  { %747 = vmatprep.mubr.f32.mxu1 %v910_v18  ;;  %754 = vmatprep.subr.mxu1 %v914_v20 }
  0x1a   :  { %791 = vmatpush3.msra.mxu0 %v896_v8  ;;  %792 = vmatprep.mubr.f32.mxu0 %v906_v14 }
  0x1b   :  { %748 = vmatmul.mubr.f32.gmra.mrb[2].mxu1 %v924_v24 }
  0x1c   :  { %755 = vmatpush3.msra.mxu1 %v914_v20  ;;  %793 = vmatmul.mubr.f32.vlgmr.msra.gmra.mrb[0].mxu0 %v908_v15 }
  0x1d   :  { %756 = vmatprep.mubr.f32.mxu1 %v919_v21  ;;  %795 = vmatprep.mubr.f32.mxu0 %v910_v18 }
  0x1f   :  { %757 = vmatmul.mubr.f32.vlgmr.msra.gmra.mrb[0].mxu1 %v922_v22 }
  0x20   :  { %796 = vmatmul.mubr.f32.gmra.mrb[2].mxu0 %v924_v24  ;;  %759 = vmatprep.mubr.f32.mxu1 %v929_v26 }
  0x23   :  { %760 = vmatmul.mubr.f32.gmra.mrb[2].mxu1 %v133_v31 }
  0xef   :  { %v794_v50 = vpop.f32.mrb[0].mxu0 }
  0xf0   :  { %v613_v51 = vpop.f32.mrb[1].mxu0 }
  0xf2   :  { %v758_v52 = vpop.f32.mrb[0].mxu1 }
  0xf3   :  { %v822_v54 = vadd.f32 %v794_v50, %v758_v52  ;;  %v320_v55 = vpop.f32.mrb[1].mxu1  ;;  %v797_v56 = vpop.f32.mrb[2].mxu0 }
  0xf4   :  { %v823_v57 = vadd.f32 %v613_v51, %v320_v55  ;;  %v625_v58 = vpop.f32.mrb[3].mxu0 }
  0xf5   :  { %v643_v59 = vsub.f32 %v822_v54, %v679_v53 }
  0xf6   :  { %v642_v60 = vsub.f32 %v823_v57, %v679_v53  ;;  %v761_v61 = vpop.f32.mrb[2].mxu1 }
  0xf7   :  { %v681_v62 = vmul.f32 -1.442695, %v643_v59  ;;  %v824_v63 = vadd.f32 %v797_v56, %v761_v61  ;;  %v334_v0 = vpop.f32.mrb[3].mxu1 }
  0xf8   :  { %v680_v1 = vmul.f32 -1.442695, %v642_v60  ;;  %v825_v2 = vadd.f32 %v625_v58, %v334_v0 }
  0xf9   :  { %842 = vpow2.f32 %v681_v62  ;;  %v645_v3 = vsub.f32 %v824_v63, %v679_v53 }
  0xfa   :  { %844 = vpow2.f32 %v680_v1  ;;  %v644_v4 = vsub.f32 %v825_v2, %v679_v53 }
  0xfb   :  { %v683_v5 = vmul.f32 -1.442695, %v645_v3 }
  0xfc   :  { %v682_v6 = vmul.f32 -1.442695, %v644_v4 }
  0xfd   :  { %846 = vpow2.f32 %v683_v5 }
  0xfe   :  { %848 = vpow2.f32 %v682_v6 }
 0x103   :  { %v843_v7 = vpop.eup %842 }
 0x104   :  { %v845_v8 = vpop.eup %844  ;;  %v659_v9 = vadd.f32 1.0, %v843_v7 }
 0x105   :  { %v658_v10 = vadd.f32 1.0, %v845_v8 }
 0x106   :  { %850 = vrcp.f32 %v659_v9 }
 0x107   :  { %v847_v11 = vpop.eup %846  ;;  %852 = vrcp.f32 %v658_v10 }
 0x108   :  { %v849_v12 = vpop.eup %848  ;;  %v661_v13 = vadd.f32 1.0, %v847_v11 }
 0x109   :  { %v660_v14 = vadd.f32 1.0, %v849_v12 }
 0x10a   :  { %854 = vrcp.f32 %v661_v13 }
 0x10b   :  { %856 = vrcp.f32 %v660_v14 }
 0x110   :  { %v851_v15 = vpop.eup %850 }
 0x111   :  { %v853_v16 = vpop.eup %852  ;;  %672 = vst.msk [vmem:[%s983_s3 + $0x8] sm:$0xff] %vm670_vm1, %v851_v15 }
 0x112   :  { %671 = vst.msk [vmem:[%s983_s3] sm:$0xff] %vm670_vm1, %v853_v16 }
 0x114   :  { %v855_v17 = vpop.eup %854 }
 0x115   :  { %v857_v18 = vpop.eup %856  ;;  %674 = vst.msk [vmem:[%s983_s3 + $0x18] sm:$0xff] %vm670_vm1, %v855_v17 }
 0x116   :  { %673 = vst.msk [vmem:[%s983_s3 + $0x10] sm:$0xff] %vm670_vm1, %v857_v18 }

</bundles_post_ra>
